<compile_context>
chip_gen: v7x
topology: tpu7x:2x2x1
jax: 0.10.0
libtpu: 0.0.40
codegen_flags: <defaults>
</compile_context>

<pallas_src>
import functools
import math

import jax
import jax.numpy as jnp
from jax.experimental import pallas as pl
from jax.experimental.pallas import tpu as pltpu

HIDDEN = 128


def _round_up(x, m):
    return ((x + m - 1) // m) * m


# ----------------------------------------------------------------------------
# Kernel: one batch tile of the full 3-layer MLP.
# ----------------------------------------------------------------------------
def _dqn_kernel(x_ref, w_ref, b_ref, out_ref, *, n_obs_p, hidden):
    n_actions = out_ref.shape[-1]
    tb = x_ref.shape[0]

    # Static row slices of the packed weight slab (offsets are multiples of 16,
    # so slices stay on bf16 sublane-tile boundaries).
    w1 = w_ref[0:n_obs_p, :]                               # (n_obs_p, H) bf16
    w2 = w_ref[n_obs_p:n_obs_p + hidden, :]                # (H, H)       bf16
    w3 = w_ref[n_obs_p + hidden:n_obs_p + 2 * hidden, :]   # (H, H) (padded actions)

    b = b_ref[...]                                         # (8, H) f32
    b1 = b[0:1, :]
    b2 = b[1:2, :]
    b3 = b[2:3, :]

    # bf16 cast in-kernel (VPU has slack) so the wrapper never materializes a
    # separate cast/padded copy of x in HBM.
    x = x_ref[...].astype(jnp.bfloat16)

    def chain(xt):
        h1 = jnp.dot(xt, w1, preferred_element_type=jnp.float32) + b1
        h1 = jnp.maximum(h1, 0.0).astype(jnp.bfloat16)
        h2 = jnp.dot(h1, w2, preferred_element_type=jnp.float32) + b2
        h2 = jnp.maximum(h2, 0.0).astype(jnp.bfloat16)
        q = jnp.dot(h2, w3, preferred_element_type=jnp.float32) + b3
        # Only the real action columns ever reach HBM (16x less writeback than
        # the padded 128-col f32 slab); padded zero-Q columns cannot leak out.
        return q[:, 0:n_actions]

    if tb >= 16 and tb % 16 == 0:
        # Two independent half-tile chains: gives the scheduler MXU work to
        # overlap with the other half's bias/ReLU/cast (helps on v5e/v6e where
        # the MXU result FIFO must drain before dependent VPU ops).
        half = tb // 2
        out_ref[0:half, :] = chain(x[0:half])
        out_ref[half:tb, :] = chain(x[half:tb])
    else:
        out_ref[...] = chain(x)


# ----------------------------------------------------------------------------
# Parameter packing: one bf16 weight slab + one f32 bias block.
# ----------------------------------------------------------------------------
def pack_params(params):
    w1, b1 = params["w1"], params["b1"]
    w2, b2 = params["w2"], params["b2"]
    w3, b3 = params["w3"], params["b3"]
    n_obs, hidden = w1.shape
    n_actions = w3.shape[1]
    assert hidden == HIDDEN
    assert n_actions <= hidden, "packing assumes n_actions <= hidden (128)"

    n_obs_p = _round_up(n_obs, 16)  # bf16 sublane-tile aligned slice boundaries

    w1p = jnp.zeros((n_obs_p, hidden), jnp.float32).at[:n_obs, :].set(w1)
    w3p = jnp.zeros((hidden, hidden), jnp.float32).at[:, :n_actions].set(w3)
    w_packed = jnp.concatenate([w1p, w2, w3p], axis=0).astype(jnp.bfloat16)

    b_packed = jnp.zeros((8, hidden), jnp.float32)
    b_packed = b_packed.at[0, :].set(b1.reshape(-1))
    b_packed = b_packed.at[1, :].set(b2.reshape(-1))
    b_packed = b_packed.at[2, :n_actions].set(b3.reshape(-1))

    return {
        "w": w_packed, "b": b_packed,
        "n_obs": n_obs, "n_obs_p": n_obs_p,
        "hidden": hidden, "n_actions": n_actions,
    }


# ----------------------------------------------------------------------------
# Tiling policy + forward wrapper.
# ----------------------------------------------------------------------------
def _choose_tiling(batch, block_batch=None):
    """Return (block_batch, padded_batch).

    * batch < 512: one tile = the whole batch (grid=(1,)): no batch padding,
      weights staged into the MXU exactly once, no per-grid-step overhead.
    * batch >= 512: >=2 tiles of ~512-1024 rows: amortizes the ~600-cycle
      grid-step cost and gives v7x's second TensorCore work on the "parallel"
      batch axis (a measured no-op on single-TC v5e/v6e, so it costs nothing).
    """
    if block_batch is not None:
        block_batch = max(8, _round_up(block_batch, 8))
        return block_batch, _round_up(batch, block_batch)
    if batch < 512:
        return batch, batch
    n_tiles = max(2, pl.cdiv(batch, 1024))
    block_batch = _round_up(pl.cdiv(batch, n_tiles), 8)
    return block_batch, block_batch * n_tiles


def dqn_forward(x, packed, *, block_batch=None):
    n_obs = packed["n_obs"]
    n_obs_p = packed["n_obs_p"]
    hidden = packed["hidden"]
    n_actions = packed["n_actions"]
    batch = x.shape[0]
    assert x.shape[1] == n_obs

    # Feature pad only in the rare unaligned case (n_obs % 16 != 0); the common
    # case passes x straight through -- no wrapper-side pad/cast HBM round trip.
    if n_obs_p != n_obs:
        x = jnp.concatenate(
            [x, jnp.zeros((batch, n_obs_p - n_obs), x.dtype)], axis=1)

    block_batch, batch_p = _choose_tiling(batch, block_batch)
    if batch_p != batch:  # ragged multi-tile batch only
        x = jnp.concatenate(
            [x, jnp.zeros((batch_p - batch, n_obs_p), x.dtype)], axis=0)

    grid = (batch_p // block_batch,)
    kernel = functools.partial(_dqn_kernel, n_obs_p=n_obs_p, hidden=hidden)

    out = pl.pallas_call(
        kernel,
        out_shape=jax.ShapeDtypeStruct((batch_p, n_actions), jnp.float32),
        grid=grid,
        in_specs=[
            # activations: pipelined over the batch grid
            pl.BlockSpec((block_batch, n_obs_p), lambda i: (i, 0)),
            # packed weights: constant block index -> DMA'd once, VMEM-resident
            pl.BlockSpec((n_obs_p + 2 * hidden, hidden), lambda i: (0, 0)),
            # packed biases: constant block index -> VMEM-resident
            pl.BlockSpec((8, hidden), lambda i: (0, 0)),
        ],
        # Output lane dim = n_actions = full array extent, so the (8,128) rule
        # does not apply; one masked vst per tile instead of a 128-col f32 slab.
        out_specs=pl.BlockSpec((block_batch, n_actions), lambda i: (i, 0)),
        compiler_params=pltpu.CompilerParams(
            dimension_semantics=("parallel",),  # shard batch tiles across v7x TCs
        ),
        # NOTE: weight/bias blocks have constant index_maps, so they are only
        # fetched once; the default second pipeline buffer costs ~72 KiB of
        # idle VMEM (negligible), so no single-buffering override is needed.
    )(x, packed["w"], packed["b"])

    return out if batch_p == batch else out[:batch]


# ----------------------------------------------------------------------------
# Init + references.
# ----------------------------------------------------------------------------
def init_params(key, n_observations, n_actions, hidden=HIDDEN):
    """Mirrors nn.Linear defaults: U(-1/sqrt(fan_in), 1/sqrt(fan_in)); weights stored (in, out)."""
    keys = jax.random.split(key, 6)

    def linear(kw, kb, fan_in, fan_out):
        bound = 1.0 / math.sqrt(fan_in)
        w = jax.random.uniform(kw, (fan_in, fan_out), jnp.float32, -bound, bound)
        b = jax.random.uniform(kb, (1, fan_out), jnp.float32, -bound, bound)
        return w, b

    w1, b1 = linear(keys[0], keys[1], n_observations, hidden)
    w2, b2 = linear(keys[2], keys[3], hidden, hidden)
    w3, b3 = linear(keys[4], keys[5], hidden, n_actions)
    return {"w1": w1, "b1": b1, "w2": w2, "b2": b2, "w3": w3, "b3": b3}


def dqn_reference_f32(x, p):
    h1 = jnp.maximum(x @ p["w1"] + p["b1"], 0.0)
    h2 = jnp.maximum(h1 @ p["w2"] + p["b2"], 0.0)
    return h2 @ p["w3"] + p["b3"]


def dqn_reference_bf16(x, p):
    """Mirrors the kernel's dtype handling: bf16 operands, f32 accumulation."""
    bf = jnp.bfloat16
    h1 = jnp.dot(x.astype(bf), p["w1"].astype(bf),
                 preferred_element_type=jnp.float32) + p["b1"]
    h1 = jnp.maximum(h1, 0.0).astype(bf)
    h2 = jnp.dot(h1, p["w2"].astype(bf),
                 preferred_element_type=jnp.float32) + p["b2"]
    h2 = jnp.maximum(h2, 0.0).astype(bf)
    return jnp.dot(h2, p["w3"].astype(bf),
                   preferred_element_type=jnp.float32) + p["b3"]


if __name__ == "__main__":
    n_observations = 16
    n_actions = 8
    batch = 32

    key = jax.random.PRNGKey(0)
    k_params, k_x = jax.random.split(key)

    params = init_params(k_params, n_observations, n_actions)
    packed = pack_params(params)
    x = jax.random.normal(k_x, (batch, n_observations), dtype=jnp.float32)

    ref_bf16 = dqn_reference_bf16(x, params)
    ref_f32 = dqn_reference_f32(x, params)

    # Default tiling: single whole-batch tile, grid=(1,), two-half interleave path.
    out = jax.block_until_ready(dqn_forward(x, packed))
    assert out.shape == (batch, n_actions)
    assert jnp.allclose(out, ref_bf16, atol=1e-3, rtol=1e-3), "mismatch vs bf16 reference"
    assert jnp.allclose(out, ref_f32, atol=5e-2, rtol=5e-2), "mismatch vs f32 reference"

    # Forced multi-tile path: grid=(4,), weight slab resident across grid steps,
    # single-chain kernel branch (tile of 8 rows).
    out2 = jax.block_until_ready(dqn_forward(x, packed, block_batch=8))
    assert out2.shape == (batch, n_actions)
    assert jnp.allclose(out2, ref_bf16, atol=1e-3, rtol=1e-3), "mismatch vs bf16 reference (tiled)"

    print("KERNEL_OK")
</pallas_src>

<mosaic_0001>
module attributes {stable_mosaic.version = 11 : i64} {
  func.func @_dqn_kernel(%arg0: i32, %arg1: memref<32x16xf32, #tpu.memory_space<vmem>>, %arg2: memref<272x128xbf16, #tpu.memory_space<vmem>>, %arg3: memref<8x128xf32, #tpu.memory_space<vmem>>, %arg4: memref<32x8xf32, #tpu.memory_space<vmem>>) attributes {dimension_semantics = [#tpu.dimension_semantics<parallel>], iteration_bounds = array<i64: 1>, scalar_prefetch = 0 : i64, scratch_operands = 0 : i64, tpu.core_type = #tpu.core_type<tc>, window_params = [{transform_indices = @transform_0, window_bounds = array<i64: 32, 16>}, {pipeline_mode = #tpu.pipeline_mode<synchronous>, transform_indices = @transform_1, window_bounds = array<i64: 272, 128>}, {pipeline_mode = #tpu.pipeline_mode<synchronous>, transform_indices = @transform_2, window_bounds = array<i64: 8, 128>}, {transform_indices = @transform_3, window_bounds = array<i64: 32, 8>}]} {
    %c0 = arith.constant 0 : index
    %c0_0 = arith.constant 0 : index
    %0 = vector.load %arg2[%c0, %c0_0] : memref<272x128xbf16, #tpu.memory_space<vmem>>, vector<16x128xbf16>
    %c16 = arith.constant 16 : index
    %c0_1 = arith.constant 0 : index
    %1 = vector.load %arg2[%c16, %c0_1] : memref<272x128xbf16, #tpu.memory_space<vmem>>, vector<128x128xbf16>
    %c144 = arith.constant 144 : index
    %c0_2 = arith.constant 0 : index
    %2 = vector.load %arg2[%c144, %c0_2] : memref<272x128xbf16, #tpu.memory_space<vmem>>, vector<128x128xbf16>
    %c0_3 = arith.constant 0 : index
    %c0_4 = arith.constant 0 : index
    %3 = vector.load %arg3[%c0_3, %c0_4] : memref<8x128xf32, #tpu.memory_space<vmem>>, vector<8x128xf32>
    %4 = vector.extract_strided_slice %3 {offsets = [0, 0], sizes = [1, 128], strides = [1, 1]} : vector<8x128xf32> to vector<1x128xf32>
    %5 = vector.extract_strided_slice %3 {offsets = [1, 0], sizes = [1, 128], strides = [1, 1]} : vector<8x128xf32> to vector<1x128xf32>
    %6 = vector.extract_strided_slice %3 {offsets = [2, 0], sizes = [1, 128], strides = [1, 1]} : vector<8x128xf32> to vector<1x128xf32>
    %c0_5 = arith.constant 0 : index
    %c0_6 = arith.constant 0 : index
    %7 = vector.load %arg1[%c0_5, %c0_6] : memref<32x16xf32, #tpu.memory_space<vmem>>, vector<32x16xf32>
    %8 = arith.truncf %7 : vector<32x16xf32> to vector<32x16xbf16>
    %9 = vector.extract_strided_slice %8 {offsets = [0, 0], sizes = [16, 16], strides = [1, 1]} : vector<32x16xbf16> to vector<16x16xbf16>
    %cst = arith.constant dense<0.000000e+00> : vector<16x128xf32>
    %10 = tpu.matmul %9, %0, %cst {dimension_numbers = #tpu.dot_dimension_numbers<[1], [0], [0], [1], [0, 0, 1, 1], [], []>} : vector<16x16xbf16>, vector<16x128xbf16>, vector<16x128xf32> -> vector<16x128xf32>
    %11 = vector.broadcast %4 : vector<1x128xf32> to vector<16x128xf32>
    %12 = arith.addf %10, %11 : vector<16x128xf32>
    %cst_7 = arith.constant 0.000000e+00 : f32
    %13 = vector.broadcast %cst_7 : f32 to vector<16x128xf32>
    %14 = arith.maximumf %12, %13 : vector<16x128xf32>
    %15 = arith.truncf %14 : vector<16x128xf32> to vector<16x128xbf16>
    %cst_8 = arith.constant dense<0.000000e+00> : vector<16x128xf32>
    %16 = tpu.matmul %15, %1, %cst_8 {dimension_numbers = #tpu.dot_dimension_numbers<[1], [0], [0], [1], [0, 0, 1, 1], [], []>} : vector<16x128xbf16>, vector<128x128xbf16>, vector<16x128xf32> -> vector<16x128xf32>
    %17 = vector.broadcast %5 : vector<1x128xf32> to vector<16x128xf32>
    %18 = arith.addf %16, %17 : vector<16x128xf32>
    %cst_9 = arith.constant 0.000000e+00 : f32
    %19 = vector.broadcast %cst_9 : f32 to vector<16x128xf32>
    %20 = arith.maximumf %18, %19 : vector<16x128xf32>
    %21 = arith.truncf %20 : vector<16x128xf32> to vector<16x128xbf16>
    %cst_10 = arith.constant dense<0.000000e+00> : vector<16x128xf32>
    %22 = tpu.matmul %21, %2, %cst_10 {dimension_numbers = #tpu.dot_dimension_numbers<[1], [0], [0], [1], [0, 0, 1, 1], [], []>} : vector<16x128xbf16>, vector<128x128xbf16>, vector<16x128xf32> -> vector<16x128xf32>
    %23 = vector.broadcast %6 : vector<1x128xf32> to vector<16x128xf32>
    %24 = arith.addf %22, %23 : vector<16x128xf32>
    %25 = vector.extract_strided_slice %24 {offsets = [0, 0], sizes = [16, 8], strides = [1, 1]} : vector<16x128xf32> to vector<16x8xf32>
    %c0_11 = arith.constant 0 : index
    %c0_12 = arith.constant 0 : index
    %26 = vector.load %arg4[%c0_11, %c0_12] : memref<32x8xf32, #tpu.memory_space<vmem>>, vector<16x8xf32>
    tpu.vector_store %arg4[%c0_11, %c0_12], %25 {strides = array<i32>} : memref<32x8xf32, #tpu.memory_space<vmem>>, vector<16x8xf32>,
    %27 = vector.extract_strided_slice %8 {offsets = [16, 0], sizes = [16, 16], strides = [1, 1]} : vector<32x16xbf16> to vector<16x16xbf16>
    %cst_13 = arith.constant dense<0.000000e+00> : vector<16x128xf32>
    %28 = tpu.matmul %27, %0, %cst_13 {dimension_numbers = #tpu.dot_dimension_numbers<[1], [0], [0], [1], [0, 0, 1, 1], [], []>} : vector<16x16xbf16>, vector<16x128xbf16>, vector<16x128xf32> -> vector<16x128xf32>
    %29 = vector.broadcast %4 : vector<1x128xf32> to vector<16x128xf32>
    %30 = arith.addf %28, %29 : vector<16x128xf32>
    %cst_14 = arith.constant 0.000000e+00 : f32
    %31 = vector.broadcast %cst_14 : f32 to vector<16x128xf32>
    %32 = arith.maximumf %30, %31 : vector<16x128xf32>
    %33 = arith.truncf %32 : vector<16x128xf32> to vector<16x128xbf16>
    %cst_15 = arith.constant dense<0.000000e+00> : vector<16x128xf32>
    %34 = tpu.matmul %33, %1, %cst_15 {dimension_numbers = #tpu.dot_dimension_numbers<[1], [0], [0], [1], [0, 0, 1, 1], [], []>} : vector<16x128xbf16>, vector<128x128xbf16>, vector<16x128xf32> -> vector<16x128xf32>
    %35 = vector.broadcast %5 : vector<1x128xf32> to vector<16x128xf32>
    %36 = arith.addf %34, %35 : vector<16x128xf32>
    %cst_16 = arith.constant 0.000000e+00 : f32
    %37 = vector.broadcast %cst_16 : f32 to vector<16x128xf32>
    %38 = arith.maximumf %36, %37 : vector<16x128xf32>
    %39 = arith.truncf %38 : vector<16x128xf32> to vector<16x128xbf16>
    %cst_17 = arith.constant dense<0.000000e+00> : vector<16x128xf32>
    %40 = tpu.matmul %39, %2, %cst_17 {dimension_numbers = #tpu.dot_dimension_numbers<[1], [0], [0], [1], [0, 0, 1, 1], [], []>} : vector<16x128xbf16>, vector<128x128xbf16>, vector<16x128xf32> -> vector<16x128xf32>
    %41 = vector.broadcast %6 : vector<1x128xf32> to vector<16x128xf32>
    %42 = arith.addf %40, %41 : vector<16x128xf32>
    %43 = vector.extract_strided_slice %42 {offsets = [0, 0], sizes = [16, 8], strides = [1, 1]} : vector<16x128xf32> to vector<16x8xf32>
    %c16_18 = arith.constant 16 : index
    %c0_19 = arith.constant 0 : index
    %44 = vector.load %arg4[%c16_18, %c0_19] : memref<32x8xf32, #tpu.memory_space<vmem>>, vector<16x8xf32>
    tpu.vector_store %arg4[%c16_18, %c0_19], %43 {strides = array<i32>} : memref<32x8xf32, #tpu.memory_space<vmem>>, vector<16x8xf32>,
    return
  }
  func.func @transform_0(%arg0: i32) -> (i32, i32) {
    %c0_i32 = arith.constant 0 : i32
    %c0_i32_0 = arith.constant 0 : i32
    return %arg0, %c0_i32 : i32, i32
  }
  func.func @transform_1(%arg0: i32) -> (i32, i32) {
    %c0_i32 = arith.constant 0 : i32
    %c0_i32_0 = arith.constant 0 : i32
    %c0_i32_1 = arith.constant 0 : i32
    return %c0_i32, %c0_i32_0 : i32, i32
  }
  func.func @transform_2(%arg0: i32) -> (i32, i32) {
    %c0_i32 = arith.constant 0 : i32
    %c0_i32_0 = arith.constant 0 : i32
    %c0_i32_1 = arith.constant 0 : i32
    return %c0_i32, %c0_i32_0 : i32, i32
  }
  func.func @transform_3(%arg0: i32) -> (i32, i32) {
    %c0_i32 = arith.constant 0 : i32
    %c0_i32_0 = arith.constant 0 : i32
    return %arg0, %c0_i32 : i32, i32
  }
}

</mosaic_0001>

<bundles_post_ra>
// kernel: tpu_custom_call.1
= control target key start
LH: loop header
LB: loop body
LE: loop exit
PB: predicated region body
PF: predicated region fallthrough
CT: control target
= control target key end

     0   :  { %8 = vsyncpa [#allocation3], 0  ;;  %s656_s12 = smov [#allocation2]   ;;  %s818_s0 = inlined_call_operand.vmem [shape: f32[32,16], index: 0, kind: input, shape index: {}]   ;;  %s819_s1 = inlined_call_operand.hbm [shape: bf16[272,128], index: 1, kind: input, shape index: {}]   ;;  %s820_s2 = inlined_call_operand.vmem [shape: f32[8,128], index: 2, kind: input, shape index: {}]   ;;  %s821_s3 = inlined_call_operand.vmem [shape: f32[32,8], index: 3, kind: output, shape index: {}]  }
   0x1   :  { %s16_s13 = sshll.u32 %s656_s12, 4  ;;  %s632_s16 = scalar_lea.hbm %s819_s1, 2176  ;;  %s17_s13 = int_to_ptr.vmem [resolvable:$true] %s16_s13 }
   0x2   :  { %p633_p0 = scmp.ne.s32.totalorder %s819_s1, %s632_s16  ;;  %p636_p1 = scmp.lt.u32.totalorder %s632_s16, %s819_s1 }
   0x4   :  { %p638_p2 = pnand %p636_p1, %p633_p0 }
   0x6   :  { %641 = shalt.err (!%p638_p2)
}
   0x7   :  { %s642_s21 = scalar_lea.vmem %s17_s13, 2176  ;;  %p647_p4 = scmp.lt.s32.totalorder %s17_s13, %s17_s13 }
   0x8   :  { %p643_p3 = scmp.ne.s32.totalorder %s17_s13, %s642_s21  ;;  %p648_p5 = scmp.lt.s32.totalorder %s642_s21, %s642_s21 }
   0xa   :  { %p649_p6 = por %p648_p5, %p647_p4 }
   0xc   :  { %p650_p7 = pnand %p649_p6, %p643_p3 }
   0xe   :  { %653 = shalt.err (!%p650_p7)
}
   0xf   :  { %s657_s22 = smov 64   ;;  %s658_s23 = smov 4  }
  0x10   :  { %22 = dma.hbm_to_vmem [thread:$0]  %s819_s1, 2176, %s17_s13, [#allocation3], %s657_s22, %s657_s22, %s658_s23  }
  0x11   :  { %654 = dma.done.wait [#allocation3], 2176  }
  0x12   :  { %655 = vsyncadd [#allocation3], 4294965120  ;;  %v659_v0 = vmov 0.0   ;;  %vm660_vm0 = vmmov 0   ;;  %v699_v1 = vld [vmem:[#allocation2] sm:$0xff]   ;;  %v65_v3 = vld [vmem:[%s818_s0 + $0x8] sm:$0xff]  ;;  %v70_v19 = vlaneseq }
  0x13   :  { %518 = vmatprep.subr.bf16.mxu0 %v659_v0  ;;  %520 = vmatprep.mubr.msk.bf16.mxu0 %vm660_vm0, %v659_v0  ;;  %v64_v2 = vld [vmem:[%s818_s0] sm:$0xff]  ;;  %vm80_vm1 = vcmask 130048   ;;  %v708_v5 = vld [vmem:[#allocation2 + $0x8] sm:$0xff]   ;;  %v712_v6 = vld [vmem:[#allocation2 + $0x10] sm:$0xff]   ;;  %vm317_vm2 = vcmask 64512  }
  0x14   :  { %524 = vmatprep.subr.bf16.mxu1 %v659_v0  ;;  %540 = vmatprep.mubr.msk.bf16.mxu1 %vm660_vm0, %v659_v0  ;;  %v68_v4 = vpack.c.bf16 %v65_v3, %v64_v2  ;;  %v718_v7 = vld [vmem:[#allocation2 + $0x18] sm:$0xff]   ;;  %v722_v8 = vld [vmem:[#allocation2 + $0x20] sm:$0xff]   ;;  %v727_v9 = vld [vmem:[#allocation2 + $0x28] sm:$0xff]   ;;  %v750_v20 = vshrl.u32 %v70_v19, 7 }
  0x15   :  { %519 = vmatpush3.bf16.msra.mxu0 %v699_v1  ;;  %525 = vmatpush3.bf16.msra.mxu1 %v708_v5  ;;  %v731_v10 = vld [vmem:[#allocation2 + $0x30] sm:$0xff]   ;;  %v736_v11 = vld [vmem:[#allocation2 + $0x38] sm:$0xff]   ;;  %v740_v12 = vld [vmem:[#allocation2 + $0x40] sm:$0xff]  }
  0x16   :  { %544 = vmatprep.subr.bf16.mxu0 %v659_v0  ;;  %526 = vmatprep.subr.bf16.mxu1 %v659_v0  ;;  %v624_v13 = vld [vmem:[#allocation2 + $0x48] sm:$0xff]   ;;  %v625_v14 = vld [vmem:[#allocation2 + $0x50] sm:$0xff]   ;;  %v626_v15 = vld [vmem:[#allocation2 + $0x58] sm:$0xff]   ;;  %v72_v21 = vsub.s32 0, %v750_v20  ;;  %v130_v38 = vsub.s32 1, %v750_v20  ;;  %v226_v58 = vsub.s32 2, %v750_v20 }
  0x17   :  { %v627_v16 = vld [vmem:[#allocation2 + $0x60] sm:$0xff]   ;;  %v628_v17 = vld [vmem:[#allocation2 + $0x68] sm:$0xff]   ;;  %v629_v18 = vld [vmem:[#allocation2 + $0x70] sm:$0xff]  }
  0x18   :  { %521 = vmatmul.mubr.msk.bf16.vlgmr.msra.gmra.mrb[0].mxu0 %vm80_vm1, %v68_v4  ;;  %v756_v22 = vld [vmem:[%s820_s2] sm:$0xff]  ;;  %v66_v33 = vld [vmem:[%s818_s0 + $0x10] sm:$0xff]  ;;  %v67_v34 = vld [vmem:[%s818_s0 + $0x18] sm:$0xff] }
  0x19   :  { %560 = vmatprep.mubr.msk.bf16.mxu0 %vm660_vm0, %v659_v0  ;;  %527 = vmatpush3.bf16.msra.mxu1 %v712_v6  ;;  %v73_v23 = vrot.slane %v756_v22, %v72_v21  ;;  %v69_v35 = vpack.c.bf16 %v67_v34, %v66_v33  ;;  %v630_v36 = vld [vmem:[#allocation2 + $0x78] sm:$0xff]   ;;  %v631_v37 = vld [vmem:[#allocation2 + $0x80] sm:$0xff]   ;;  %v131_v39 = vrot.slane %v756_v22, %v130_v38 }
  0x1a   :  { %528 = vmatprep.subr.bf16.mxu1 %v659_v0  ;;  %545 = vmatpush3.bf16.msra.mxu0 %v624_v13  ;;  %v227_v59 = vrot.slane %v756_v22, %v226_v58 }
  0x1b   :  { %546 = vmatprep.subr.bf16.mxu0 %v659_v0 }
  0x1d   :  { %529 = vmatpush3.bf16.msra.mxu1 %v718_v7 }
  0x1e   :  { %530 = vmatprep.subr.bf16.mxu1 %v659_v0  ;;  %547 = vmatpush3.bf16.msra.mxu0 %v625_v14 }
  0x1f   :  { %548 = vmatprep.subr.bf16.mxu0 %v659_v0 }
  0x21   :  { %531 = vmatpush3.bf16.msra.mxu1 %v722_v8 }
  0x22   :  { %532 = vmatprep.subr.bf16.mxu1 %v659_v0  ;;  %549 = vmatpush3.bf16.msra.mxu0 %v626_v15 }
  0x23   :  { %550 = vmatprep.subr.bf16.mxu0 %v659_v0 }
  0x25   :  { %533 = vmatpush3.bf16.msra.mxu1 %v727_v9 }
  0x26   :  { %534 = vmatprep.subr.bf16.mxu1 %v659_v0  ;;  %551 = vmatpush3.bf16.msra.mxu0 %v627_v16 }
  0x27   :  { %552 = vmatprep.subr.bf16.mxu0 %v659_v0 }
  0x29   :  { %535 = vmatpush3.bf16.msra.mxu1 %v731_v10 }
  0x2a   :  { %536 = vmatprep.subr.bf16.mxu1 %v659_v0  ;;  %553 = vmatpush3.bf16.msra.mxu0 %v628_v17 }
  0x2b   :  { %554 = vmatprep.subr.bf16.mxu0 %v659_v0 }
  0x2d   :  { %537 = vmatpush3.bf16.msra.mxu1 %v736_v11 }
  0x2e   :  { %538 = vmatprep.subr.bf16.mxu1 %v659_v0  ;;  %555 = vmatpush3.bf16.msra.mxu0 %v629_v18 }
  0x2f   :  { %556 = vmatprep.subr.bf16.mxu0 %v659_v0 }
  0x31   :  { %539 = vmatpush3.bf16.msra.mxu1 %v740_v12 }
  0x32   :  { %564 = vmatprep.subr.bf16.mxu1 %v659_v0  ;;  %557 = vmatpush3.bf16.msra.mxu0 %v630_v36 }
  0x33   :  { %558 = vmatprep.subr.bf16.mxu0 %v659_v0 }
  0x36   :  { %559 = vmatpush3.bf16.msra.mxu0 %v631_v37 }
  0x37   :  { %570 = vmatprep.subr.bf16.mxu0 %v659_v0 }
  0xeb   :  { %v118_v24 = vpop.f32.mrb[0].mxu0 }
  0xec   :  { %v119_v25 = vadd.f32 %v118_v24, %v73_v23  ;;  %v522_v26 = vpop.f32.mrb[1].mxu0 }
  0xed   :  { %v121_v27 = vpop.f32.mrb[2].mxu0 }
  0xee   :  { %v122_v28 = vadd.f32 %v121_v27, %v73_v23  ;;  %v523_v29 = vpop.f32.mrb[3].mxu0  ;;  %v125_v30 = vmax.f32 %v119_v25, 0.0 }
  0xf0   :  { %v126_v31 = vmax.f32 %v122_v28, 0.0 }
  0xf2   :  { %v127_v32 = vpack.c.bf16 %v126_v31, %v125_v30 }
  0xf4   :  { %541 = vmatmul.mubr.bf16.vlgmr.msra.gmra.mrb[0].mxu1 %v127_v32 }
  0xf5   :  { %565 = vmatpush3.bf16.msra.mxu1 %v699_v1  ;;  %566 = vmatprep.mubr.msk.bf16.mxu1 %vm660_vm0, %v659_v0 }
  0xf6   :  { %590 = vmatprep.subr.bf16.mxu1 %v659_v0 }
  0xfc   :  { %567 = vmatmul.mubr.msk.bf16.vlgmr.msra.gmra.mrb[4].mxu1 %vm80_vm1, %v69_v35 }
  0xfd   :  { %591 = vmatpush3.bf16.msra.mxu1 %v624_v13  ;;  %606 = vmatprep.mubr.msk.bf16.mxu1 %vm660_vm0, %v659_v0 }
  0xfe   :  { %592 = vmatprep.subr.bf16.mxu1 %v659_v0 }
 0x101   :  { %593 = vmatpush3.bf16.msra.mxu1 %v625_v14 }
 0x102   :  { %594 = vmatprep.subr.bf16.mxu1 %v659_v0 }
 0x105   :  { %595 = vmatpush3.bf16.msra.mxu1 %v626_v15 }
 0x106   :  { %596 = vmatprep.subr.bf16.mxu1 %v659_v0 }
 0x109   :  { %597 = vmatpush3.bf16.msra.mxu1 %v627_v16 }
 0x10a   :  { %598 = vmatprep.subr.bf16.mxu1 %v659_v0 }
 0x10d   :  { %599 = vmatpush3.bf16.msra.mxu1 %v628_v17 }
 0x10e   :  { %600 = vmatprep.subr.bf16.mxu1 %v659_v0 }
 0x111   :  { %601 = vmatpush3.bf16.msra.mxu1 %v629_v18 }
 0x112   :  { %602 = vmatprep.subr.bf16.mxu1 %v659_v0 }
 0x115   :  { %603 = vmatpush3.bf16.msra.mxu1 %v630_v36 }
 0x116   :  { %604 = vmatprep.subr.bf16.mxu1 %v659_v0 }
 0x119   :  { %605 = vmatpush3.bf16.msra.mxu1 %v631_v37 }
 0x1c7   :  { %v214_v40 = vpop.f32.mrb[0].mxu1 }
 0x1c8   :  { %v215_v41 = vadd.f32 %v214_v40, %v131_v39  ;;  %v542_v42 = vpop.f32.mrb[1].mxu1 }
 0x1c9   :  { %v217_v43 = vpop.f32.mrb[2].mxu1 }
 0x1ca   :  { %v218_v44 = vadd.f32 %v217_v43, %v131_v39  ;;  %v543_v45 = vpop.f32.mrb[3].mxu1  ;;  %v221_v46 = vmax.f32 %v215_v41, 0.0 }
 0x1cc   :  { %v222_v47 = vmax.f32 %v218_v44, 0.0 }
 0x1ce   :  { %v223_v48 = vpack.c.bf16 %v222_v47, %v221_v46 }
 0x1cf   :  { %v357_v49 = vpop.f32.mrb[4].mxu1 }
 0x1d0   :  { %561 = vmatmul.mubr.bf16.vlgmr.msra.gmra.mrb[4].mxu0 %v223_v48  ;;  %v358_v50 = vadd.f32 %v357_v49, %v73_v23  ;;  %v568_v51 = vpop.f32.mrb[5].mxu1 }
 0x1d1   :  { %571 = vmatpush3.bf16.msra.mxu0 %v708_v5  ;;  %v360_v52 = vpop.f32.mrb[6].mxu1  ;;  %586 = vmatprep.mubr.msk.bf16.mxu0 %vm660_vm0, %v659_v0 }
 0x1d2   :  { %572 = vmatprep.subr.bf16.mxu0 %v659_v0  ;;  %v364_v53 = vmax.f32 %v358_v50, 0.0  ;;  %v361_v54 = vadd.f32 %v360_v52, %v73_v23  ;;  %v569_v55 = vpop.f32.mrb[7].mxu1 }
 0x1d4   :  { %v365_v56 = vmax.f32 %v361_v54, 0.0 }
 0x1d5   :  { %573 = vmatpush3.bf16.msra.mxu0 %v712_v6 }
 0x1d6   :  { %574 = vmatprep.subr.bf16.mxu0 %v659_v0  ;;  %v366_v57 = vpack.c.bf16 %v365_v56, %v364_v53 }
 0x1d9   :  { %575 = vmatpush3.bf16.msra.mxu0 %v718_v7 }
 0x1da   :  { %576 = vmatprep.subr.bf16.mxu0 %v659_v0 }
 0x1dd   :  { %577 = vmatpush3.bf16.msra.mxu0 %v722_v8 }
 0x1de   :  { %578 = vmatprep.subr.bf16.mxu0 %v659_v0 }
 0x1e1   :  { %579 = vmatpush3.bf16.msra.mxu0 %v727_v9 }
 0x1e2   :  { %580 = vmatprep.subr.bf16.mxu0 %v659_v0 }
 0x1e5   :  { %581 = vmatpush3.bf16.msra.mxu0 %v731_v10 }
 0x1e6   :  { %582 = vmatprep.subr.bf16.mxu0 %v659_v0 }
 0x1e9   :  { %583 = vmatpush3.bf16.msra.mxu0 %v736_v11 }
 0x1ea   :  { %584 = vmatprep.subr.bf16.mxu0 %v659_v0 }
 0x1ed   :  { %585 = vmatpush3.bf16.msra.mxu0 %v740_v12 }
 0x1f0   :  { %587 = vmatmul.mubr.bf16.vlgmr.msra.gmra.mrb[8].mxu0 %v366_v57 }
 0x2a3   :  { %v310_v60 = vpop.f32.mrb[4].mxu0 }
 0x2a4   :  { %v311_v61 = vadd.f32 %v310_v60, %v227_v59  ;;  %v562_v62 = vpop.f32.mrb[5].mxu0 }
 0x2a5   :  { %v313_v63 = vpop.f32.mrb[6].mxu0 }
 0x2a6   :  { %318 = vst.msk [vmem:[%s821_s3] sm:$0xff] %vm317_vm2, %v311_v61  ;;  %v314_v1 = vadd.f32 %v313_v63, %v227_v59  ;;  %v563_v2 = vpop.f32.mrb[7].mxu0 }
 0x2a8   :  { %319 = vst.msk [vmem:[%s821_s3 + $0x8] sm:$0xff] %vm317_vm2, %v314_v1 }
 0x2c3   :  { %v401_v0 = vpop.f32.mrb[8].mxu0 }
 0x2c4   :  { %v402_v3 = vadd.f32 %v401_v0, %v131_v39  ;;  %v588_v4 = vpop.f32.mrb[9].mxu0 }
 0x2c5   :  { %v404_v5 = vpop.f32.mrb[10].mxu0 }
 0x2c6   :  { %v405_v6 = vadd.f32 %v404_v5, %v131_v39  ;;  %v589_v7 = vpop.f32.mrb[11].mxu0  ;;  %v408_v8 = vmax.f32 %v402_v3, 0.0 }
 0x2c8   :  { %v409_v9 = vmax.f32 %v405_v6, 0.0 }
 0x2ca   :  { %v410_v10 = vpack.c.bf16 %v409_v9, %v408_v8 }
 0x2cc   :  { %607 = vmatmul.mubr.bf16.vlgmr.msra.gmra.mrb[8].mxu1 %v410_v10 }
 0x39f   :  { %v445_v11 = vpop.f32.mrb[8].mxu1 }
 0x3a0   :  { %v446_v12 = vadd.f32 %v445_v11, %v227_v59  ;;  %v608_v13 = vpop.f32.mrb[9].mxu1 }
 0x3a1   :  { %v448_v14 = vpop.f32.mrb[10].mxu1 }
 0x3a2   :  { %452 = vst.msk [vmem:[%s821_s3 + $0x10] sm:$0xff] %vm317_vm2, %v446_v12  ;;  %v449_v15 = vadd.f32 %v448_v14, %v227_v59  ;;  %v609_v16 = vpop.f32.mrb[11].mxu1 }
 0x3a4   :  { %453 = vst.msk [vmem:[%s821_s3 + $0x18] sm:$0xff] %vm317_vm2, %v449_v15 }
 0x3a5   :  { %458 = vsyncpa [#allocation3], 1 }

</bundles_post_ra>
